<compile_context>
chip_gen: v7x
topology: tpu7x:2x2x1
jax: 0.10.0
libtpu: 0.0.40
codegen_flags: <defaults>
</compile_context>

<pallas_src>
import jax
import jax.numpy as jnp
from jax.experimental import pallas as pl
from jax.experimental.pallas import tpu as pltpu

HIDDEN_LAYER_SIZE1 = 128
HIDDEN_LAYER_SIZE2 = 128
LEAKY_SLOPE = 0.01  # torch nn.LeakyReLU default negative_slope


def _leaky_relu(x):
    return jnp.where(x > 0, x, LEAKY_SLOPE * x)


def _round_up(x, m):
    return ((x + m - 1) // m) * m


def critic_kernel(s_ref, a_ref, w1s_ref, w1a_ref, b1_ref,
                  w2_ref, b2_ref, w3r_ref, b3_ref, o_ref):
    s = s_ref[...]          # (TB, S)  f32
    a = a_ref[...]          # (TB, A)  f32
    w1s = w1s_ref[...]      # (S, H1)  f32
    w1a = w1a_ref[...]      # (A, H1)  f32

    tb = s.shape[0]
    h1_dim = w1s.shape[1]

    # ---- Layer 1: tiny contraction (K = S + A) done as VPU broadcast FMAs ----
    h1 = jnp.broadcast_to(b1_ref[...], (tb, h1_dim)).astype(jnp.float32)
    for k in range(s.shape[1]):
        h1 = h1 + s[:, k:k + 1] * w1s[k:k + 1, :]
    for k in range(a.shape[1]):
        h1 = h1 + a[:, k:k + 1] * w1a[k:k + 1, :]
    h1 = _leaky_relu(h1)

    # ---- Layer 2: 128x128 matmul on the MXU, bf16 operands, f32 accumulate ----
    h2 = jnp.dot(h1.astype(jnp.bfloat16),
                 w2_ref[...].astype(jnp.bfloat16),
                 preferred_element_type=jnp.float32) + b2_ref[...]
    h2 = _leaky_relu(h2)

    # ---- Layer 3: output width is 1 -> VPU multiply + XLU lane reduction ----
    w3r = w3r_ref[...]      # (out, H2) f32 (torch-style row-major weight)
    if w3r.shape[0] == 1:
        out = jnp.sum(h2 * w3r, axis=-1, keepdims=True) + b3_ref[...]
    else:
        # General out_size > 1 fallback: contract on the last dims (h2 @ w3r.T).
        out = jax.lax.dot_general(
            h2.astype(jnp.bfloat16), w3r.astype(jnp.bfloat16),
            dimension_numbers=(((1,), (1,)), ((), ())),
            preferred_element_type=jnp.float32) + b3_ref[...]

    o_ref[...] = out.astype(o_ref.dtype)


def critic_forward(state, action, params, tile_b=512):
    """state: [B, S], action: [B, A]; returns [B, output_size] (float32)."""
    w1s, w1a, b1, w2, b2, w3r, b3 = params
    B, S = state.shape
    A = action.shape[1]
    out_size = w3r.shape[0]

    # Batch tile: large enough to amortize per-step overhead, 8-aligned.
    tb = min(tile_b, _round_up(B, 8))
    b_pad = _round_up(B, tb)
    if b_pad != B:
        pad = b_pad - B
        state = jnp.pad(state, ((0, pad), (0, 0)))
        action = jnp.pad(action, ((0, pad), (0, 0)))

    grid = (pl.cdiv(b_pad, tb),)

    batch_spec = lambda feat: pl.BlockSpec((tb, feat), lambda i: (i, 0))
    # Constant block index -> weights/biases are DMA'd once and stay resident in VMEM.
    resident = lambda shape: pl.BlockSpec(shape, lambda i: (0, 0))

    out = pl.pallas_call(
        critic_kernel,
        out_shape=jax.ShapeDtypeStruct((b_pad, out_size), jnp.float32),
        grid=grid,
        in_specs=[
            batch_spec(S),
            batch_spec(A),
            resident(w1s.shape), resident(w1a.shape), resident(b1.shape),
            resident(w2.shape), resident(b2.shape),
            resident(w3r.shape), resident(b3.shape),
        ],
        out_specs=pl.BlockSpec((tb, out_size), lambda i: (i, 0)),
        compiler_params=pltpu.CompilerParams(
            dimension_semantics=("parallel",)),
    )(state, action, w1s, w1a, b1, w2, b2, w3r, b3)

    return out[:B] if b_pad != B else out


def init_critic_params(key, state_dim, action_dim, output_size):
    """Deterministic init mirroring torch nn.Linear default: U(-1/sqrt(fan_in), 1/sqrt(fan_in)).

    W1 is stored pre-split into (state part, action part); W3 is stored
    torch-style (out_features, in_features) so the kernel can use it as a row.
    """
    input_size = state_dim + action_dim

    def linear_init(key, fan_in, fan_out):
        kw, kb = jax.random.split(key)
        bound = 1.0 / jnp.sqrt(jnp.float32(fan_in))
        w = jax.random.uniform(kw, (fan_in, fan_out), jnp.float32, -bound, bound)
        b = jax.random.uniform(kb, (1, fan_out), jnp.float32, -bound, bound)
        return w, b

    k1, k2, k3 = jax.random.split(key, 3)
    w1, b1 = linear_init(k1, input_size, HIDDEN_LAYER_SIZE1)
    w1s, w1a = w1[:state_dim], w1[state_dim:]
    w2, b2 = linear_init(k2, HIDDEN_LAYER_SIZE1, HIDDEN_LAYER_SIZE2)
    w3, b3 = linear_init(k3, HIDDEN_LAYER_SIZE2, output_size)
    w3r = w3.T  # (output_size, HIDDEN_LAYER_SIZE2)
    return (w1s, w1a, b1, w2, b2, w3r, b3)


def critic_reference(state, action, params):
    w1s, w1a, b1, w2, b2, w3r, b3 = params
    x = jnp.concatenate([state, action], axis=1)
    w1 = jnp.concatenate([w1s, w1a], axis=0)
    h1 = _leaky_relu(x @ w1 + b1)
    h2 = _leaky_relu(h1 @ w2 + b2)
    return h2 @ w3r.T + b3


if __name__ == "__main__":
    key = jax.random.PRNGKey(0)
    k_params, k_state, k_action = jax.random.split(key, 3)

    batch = 8
    state_dim = 6
    action_dim = 2
    output_size = 1

    params = init_critic_params(k_params, state_dim, action_dim, output_size)
    state = jax.random.normal(k_state, (batch, state_dim), jnp.float32)
    action = jax.random.normal(k_action, (batch, action_dim), jnp.float32)

    out = jax.jit(critic_forward)(state, action, params)
    out = jax.block_until_ready(out)

    ref = critic_reference(state, action, params)
    assert out.shape == (batch, output_size)
    # Layer 2 runs with bf16 MXU operands (f32 accumulation), so use a
    # correspondingly loosened tolerance vs the pure-f32 reference.
    assert jnp.allclose(out, ref, atol=2e-2, rtol=2e-2)

    print("KERNEL_OK")
</pallas_src>

<mosaic_0001>
module attributes {stable_mosaic.version = 11 : i64} {
  func.func @critic_kernel(%arg0: i32, %arg1: memref<8x6xf32, #tpu.memory_space<vmem>>, %arg2: memref<8x2xf32, #tpu.memory_space<vmem>>, %arg3: memref<6x128xf32, #tpu.memory_space<vmem>>, %arg4: memref<2x128xf32, #tpu.memory_space<vmem>>, %arg5: memref<1x128xf32, #tpu.memory_space<vmem>>, %arg6: memref<128x128xf32, #tpu.memory_space<vmem>>, %arg7: memref<1x128xf32, #tpu.memory_space<vmem>>, %arg8: memref<1x128xf32, #tpu.memory_space<vmem>>, %arg9: memref<1x1xf32, #tpu.memory_space<vmem>>, %arg10: memref<8x1xf32, #tpu.memory_space<vmem>>) attributes {dimension_semantics = [#tpu.dimension_semantics<parallel>], iteration_bounds = array<i64: 1>, scalar_prefetch = 0 : i64, scratch_operands = 0 : i64, tpu.core_type = #tpu.core_type<tc>, window_params = [{transform_indices = @transform_0, window_bounds = array<i64: 8, 6>}, {transform_indices = @transform_1, window_bounds = array<i64: 8, 2>}, {pipeline_mode = #tpu.pipeline_mode<synchronous>, transform_indices = @transform_2, window_bounds = array<i64: 6, 128>}, {pipeline_mode = #tpu.pipeline_mode<synchronous>, transform_indices = @transform_3, window_bounds = array<i64: 2, 128>}, {pipeline_mode = #tpu.pipeline_mode<synchronous>, transform_indices = @transform_4, window_bounds = array<i64: 1, 128>}, {pipeline_mode = #tpu.pipeline_mode<synchronous>, transform_indices = @transform_5, window_bounds = array<i64: 128, 128>}, {pipeline_mode = #tpu.pipeline_mode<synchronous>, transform_indices = @transform_6, window_bounds = array<i64: 1, 128>}, {pipeline_mode = #tpu.pipeline_mode<synchronous>, transform_indices = @transform_7, window_bounds = array<i64: 1, 128>}, {pipeline_mode = #tpu.pipeline_mode<synchronous>, transform_indices = @transform_8, window_bounds = array<i64: 1, 1>}, {transform_indices = @transform_9, window_bounds = array<i64: 8, 1>}]} {
    %c0 = arith.constant 0 : index
    %c0_0 = arith.constant 0 : index
    %0 = vector.load %arg1[%c0, %c0_0] : memref<8x6xf32, #tpu.memory_space<vmem>>, vector<8x6xf32>
    %c0_1 = arith.constant 0 : index
    %c0_2 = arith.constant 0 : index
    %1 = vector.load %arg2[%c0_1, %c0_2] : memref<8x2xf32, #tpu.memory_space<vmem>>, vector<8x2xf32>
    %c0_3 = arith.constant 0 : index
    %c0_4 = arith.constant 0 : index
    %2 = vector.load %arg3[%c0_3, %c0_4] : memref<6x128xf32, #tpu.memory_space<vmem>>, vector<6x128xf32>
    %c0_5 = arith.constant 0 : index
    %c0_6 = arith.constant 0 : index
    %3 = vector.load %arg4[%c0_5, %c0_6] : memref<2x128xf32, #tpu.memory_space<vmem>>, vector<2x128xf32>
    %c0_7 = arith.constant 0 : index
    %c0_8 = arith.constant 0 : index
    %4 = vector.load %arg5[%c0_7, %c0_8] : memref<1x128xf32, #tpu.memory_space<vmem>>, vector<1x128xf32>
    %5 = vector.shape_cast %4 : vector<1x128xf32> to vector<1x128xf32>
    %6 = vector.broadcast %5 : vector<1x128xf32> to vector<8x128xf32>
    %7 = vector.extract_strided_slice %0 {offsets = [0, 0], sizes = [8, 1], strides = [1, 1]} : vector<8x6xf32> to vector<8x1xf32>
    %8 = vector.extract_strided_slice %2 {offsets = [0, 0], sizes = [1, 128], strides = [1, 1]} : vector<6x128xf32> to vector<1x128xf32>
    %9 = vector.broadcast %7 : vector<8x1xf32> to vector<8x128xf32>
    %10 = vector.broadcast %8 : vector<1x128xf32> to vector<8x128xf32>
    %11 = arith.mulf %9, %10 : vector<8x128xf32>
    %12 = arith.addf %6, %11 : vector<8x128xf32>
    %13 = vector.extract_strided_slice %0 {offsets = [0, 1], sizes = [8, 1], strides = [1, 1]} : vector<8x6xf32> to vector<8x1xf32>
    %14 = vector.extract_strided_slice %2 {offsets = [1, 0], sizes = [1, 128], strides = [1, 1]} : vector<6x128xf32> to vector<1x128xf32>
    %15 = vector.broadcast %13 : vector<8x1xf32> to vector<8x128xf32>
    %16 = vector.broadcast %14 : vector<1x128xf32> to vector<8x128xf32>
    %17 = arith.mulf %15, %16 : vector<8x128xf32>
    %18 = arith.addf %12, %17 : vector<8x128xf32>
    %19 = vector.extract_strided_slice %0 {offsets = [0, 2], sizes = [8, 1], strides = [1, 1]} : vector<8x6xf32> to vector<8x1xf32>
    %20 = vector.extract_strided_slice %2 {offsets = [2, 0], sizes = [1, 128], strides = [1, 1]} : vector<6x128xf32> to vector<1x128xf32>
    %21 = vector.broadcast %19 : vector<8x1xf32> to vector<8x128xf32>
    %22 = vector.broadcast %20 : vector<1x128xf32> to vector<8x128xf32>
    %23 = arith.mulf %21, %22 : vector<8x128xf32>
    %24 = arith.addf %18, %23 : vector<8x128xf32>
    %25 = vector.extract_strided_slice %0 {offsets = [0, 3], sizes = [8, 1], strides = [1, 1]} : vector<8x6xf32> to vector<8x1xf32>
    %26 = vector.extract_strided_slice %2 {offsets = [3, 0], sizes = [1, 128], strides = [1, 1]} : vector<6x128xf32> to vector<1x128xf32>
    %27 = vector.broadcast %25 : vector<8x1xf32> to vector<8x128xf32>
    %28 = vector.broadcast %26 : vector<1x128xf32> to vector<8x128xf32>
    %29 = arith.mulf %27, %28 : vector<8x128xf32>
    %30 = arith.addf %24, %29 : vector<8x128xf32>
    %31 = vector.extract_strided_slice %0 {offsets = [0, 4], sizes = [8, 1], strides = [1, 1]} : vector<8x6xf32> to vector<8x1xf32>
    %32 = vector.extract_strided_slice %2 {offsets = [4, 0], sizes = [1, 128], strides = [1, 1]} : vector<6x128xf32> to vector<1x128xf32>
    %33 = vector.broadcast %31 : vector<8x1xf32> to vector<8x128xf32>
    %34 = vector.broadcast %32 : vector<1x128xf32> to vector<8x128xf32>
    %35 = arith.mulf %33, %34 : vector<8x128xf32>
    %36 = arith.addf %30, %35 : vector<8x128xf32>
    %37 = vector.extract_strided_slice %0 {offsets = [0, 5], sizes = [8, 1], strides = [1, 1]} : vector<8x6xf32> to vector<8x1xf32>
    %38 = vector.extract_strided_slice %2 {offsets = [5, 0], sizes = [1, 128], strides = [1, 1]} : vector<6x128xf32> to vector<1x128xf32>
    %39 = vector.broadcast %37 : vector<8x1xf32> to vector<8x128xf32>
    %40 = vector.broadcast %38 : vector<1x128xf32> to vector<8x128xf32>
    %41 = arith.mulf %39, %40 : vector<8x128xf32>
    %42 = arith.addf %36, %41 : vector<8x128xf32>
    %43 = vector.extract_strided_slice %1 {offsets = [0, 0], sizes = [8, 1], strides = [1, 1]} : vector<8x2xf32> to vector<8x1xf32>
    %44 = vector.extract_strided_slice %3 {offsets = [0, 0], sizes = [1, 128], strides = [1, 1]} : vector<2x128xf32> to vector<1x128xf32>
    %45 = vector.broadcast %43 : vector<8x1xf32> to vector<8x128xf32>
    %46 = vector.broadcast %44 : vector<1x128xf32> to vector<8x128xf32>
    %47 = arith.mulf %45, %46 : vector<8x128xf32>
    %48 = arith.addf %42, %47 : vector<8x128xf32>
    %49 = vector.extract_strided_slice %1 {offsets = [0, 1], sizes = [8, 1], strides = [1, 1]} : vector<8x2xf32> to vector<8x1xf32>
    %50 = vector.extract_strided_slice %3 {offsets = [1, 0], sizes = [1, 128], strides = [1, 1]} : vector<2x128xf32> to vector<1x128xf32>
    %51 = vector.broadcast %49 : vector<8x1xf32> to vector<8x128xf32>
    %52 = vector.broadcast %50 : vector<1x128xf32> to vector<8x128xf32>
    %53 = arith.mulf %51, %52 : vector<8x128xf32>
    %54 = arith.addf %48, %53 : vector<8x128xf32>
    %cst = arith.constant 0.000000e+00 : f32
    %55 = vector.broadcast %cst : f32 to vector<8x128xf32>
    %56 = arith.cmpf ogt, %54, %55 : vector<8x128xf32>
    %cst_9 = arith.constant 0.00999999977 : f32
    %57 = vector.broadcast %cst_9 : f32 to vector<8x128xf32>
    %58 = arith.mulf %57, %54 : vector<8x128xf32>
    %59 = arith.select %56, %54, %58 : vector<8x128xi1>, vector<8x128xf32>
    %60 = arith.truncf %59 : vector<8x128xf32> to vector<8x128xbf16>
    %c0_10 = arith.constant 0 : index
    %c0_11 = arith.constant 0 : index
    %61 = vector.load %arg6[%c0_10, %c0_11] : memref<128x128xf32, #tpu.memory_space<vmem>>, vector<128x128xf32>
    %62 = arith.truncf %61 : vector<128x128xf32> to vector<128x128xbf16>
    %cst_12 = arith.constant dense<0.000000e+00> : vector<8x128xf32>
    %63 = tpu.matmul %60, %62, %cst_12 {dimension_numbers = #tpu.dot_dimension_numbers<[1], [0], [0], [1], [0, 0, 1, 1], [], []>} : vector<8x128xbf16>, vector<128x128xbf16>, vector<8x128xf32> -> vector<8x128xf32>
    %c0_13 = arith.constant 0 : index
    %c0_14 = arith.constant 0 : index
    %64 = vector.load %arg7[%c0_13, %c0_14] : memref<1x128xf32, #tpu.memory_space<vmem>>, vector<1x128xf32>
    %65 = vector.broadcast %64 : vector<1x128xf32> to vector<8x128xf32>
    %66 = arith.addf %63, %65 : vector<8x128xf32>
    %cst_15 = arith.constant 0.000000e+00 : f32
    %67 = vector.broadcast %cst_15 : f32 to vector<8x128xf32>
    %68 = arith.cmpf ogt, %66, %67 : vector<8x128xf32>
    %cst_16 = arith.constant 0.00999999977 : f32
    %69 = vector.broadcast %cst_16 : f32 to vector<8x128xf32>
    %70 = arith.mulf %69, %66 : vector<8x128xf32>
    %71 = arith.select %68, %66, %70 : vector<8x128xi1>, vector<8x128xf32>
    %c0_17 = arith.constant 0 : index
    %c0_18 = arith.constant 0 : index
    %72 = vector.load %arg8[%c0_17, %c0_18] : memref<1x128xf32, #tpu.memory_space<vmem>>, vector<1x128xf32>
    %73 = vector.broadcast %72 : vector<1x128xf32> to vector<8x128xf32>
    %74 = arith.mulf %71, %73 : vector<8x128xf32>
    %cst_19 = arith.constant dense<0.000000e+00> : vector<8xf32>
    %75 = vector.multi_reduction <add>, %74, %cst_19 [1] : vector<8x128xf32> to vector<8xf32>
    %76 = vector.shape_cast %75 : vector<8xf32> to vector<8x1xf32>
    %c0_20 = arith.constant 0 : index
    %c0_21 = arith.constant 0 : index
    %77 = vector.load %arg9[%c0_20, %c0_21] : memref<1x1xf32, #tpu.memory_space<vmem>>, vector<1x1xf32>
    %78 = vector.broadcast %77 : vector<1x1xf32> to vector<8x1xf32>
    %79 = arith.addf %76, %78 : vector<8x1xf32>
    %c0_22 = arith.constant 0 : index
    %c0_23 = arith.constant 0 : index
    %80 = vector.load %arg10[%c0_22, %c0_23] : memref<8x1xf32, #tpu.memory_space<vmem>>, vector<8x1xf32>
    tpu.vector_store %arg10[%c0_22, %c0_23], %79 {strides = array<i32>} : memref<8x1xf32, #tpu.memory_space<vmem>>, vector<8x1xf32>,
    return
  }
  func.func @transform_0(%arg0: i32) -> (i32, i32) {
    %c0_i32 = arith.constant 0 : i32
    %c0_i32_0 = arith.constant 0 : i32
    return %arg0, %c0_i32 : i32, i32
  }
  func.func @transform_1(%arg0: i32) -> (i32, i32) {
    %c0_i32 = arith.constant 0 : i32
    %c0_i32_0 = arith.constant 0 : i32
    return %arg0, %c0_i32 : i32, i32
  }
  func.func @transform_2(%arg0: i32) -> (i32, i32) {
    %c0_i32 = arith.constant 0 : i32
    %c0_i32_0 = arith.constant 0 : i32
    %c0_i32_1 = arith.constant 0 : i32
    return %c0_i32, %c0_i32_0 : i32, i32
  }
  func.func @transform_3(%arg0: i32) -> (i32, i32) {
    %c0_i32 = arith.constant 0 : i32
    %c0_i32_0 = arith.constant 0 : i32
    %c0_i32_1 = arith.constant 0 : i32
    return %c0_i32, %c0_i32_0 : i32, i32
  }
  func.func @transform_4(%arg0: i32) -> (i32, i32) {
    %c0_i32 = arith.constant 0 : i32
    %c0_i32_0 = arith.constant 0 : i32
    %c0_i32_1 = arith.constant 0 : i32
    return %c0_i32, %c0_i32_0 : i32, i32
  }
  func.func @transform_5(%arg0: i32) -> (i32, i32) {
    %c0_i32 = arith.constant 0 : i32
    %c0_i32_0 = arith.constant 0 : i32
    %c0_i32_1 = arith.constant 0 : i32
    return %c0_i32, %c0_i32_0 : i32, i32
  }
  func.func @transform_6(%arg0: i32) -> (i32, i32) {
    %c0_i32 = arith.constant 0 : i32
    %c0_i32_0 = arith.constant 0 : i32
    %c0_i32_1 = arith.constant 0 : i32
    return %c0_i32, %c0_i32_0 : i32, i32
  }
  func.func @transform_7(%arg0: i32) -> (i32, i32) {
    %c0_i32 = arith.constant 0 : i32
    %c0_i32_0 = arith.constant 0 : i32
    %c0_i32_1 = arith.constant 0 : i32
    return %c0_i32, %c0_i32_0 : i32, i32
  }
  func.func @transform_8(%arg0: i32) -> (i32, i32) {
    %c0_i32 = arith.constant 0 : i32
    %c0_i32_0 = arith.constant 0 : i32
    %c0_i32_1 = arith.constant 0 : i32
    return %c0_i32, %c0_i32_0 : i32, i32
  }
  func.func @transform_9(%arg0: i32) -> (i32, i32) {
    %c0_i32 = arith.constant 0 : i32
    %c0_i32_0 = arith.constant 0 : i32
    return %arg0, %c0_i32 : i32, i32
  }
}

</mosaic_0001>

<bundles_post_ra>
// kernel: critic_forward.1
= control target key start
LH: loop header
LB: loop body
LE: loop exit
PB: predicated region body
PF: predicated region fallthrough
CT: control target
= control target key end

     0   :  { %s422_s0 = inlined_call_operand.vmem [shape: f32[8,6], index: 0, kind: input, shape index: {}]   ;;  %s423_s1 = inlined_call_operand.vmem [shape: f32[8,2], index: 1, kind: input, shape index: {}]   ;;  %s424_s2 = inlined_call_operand.vmem [shape: f32[6,128], index: 2, kind: input, shape index: {}]   ;;  %s425_s3 = inlined_call_operand.vmem [shape: f32[2,128], index: 3, kind: input, shape index: {}]   ;;  %s426_s4 = inlined_call_operand.vmem [shape: f32[1,128], index: 4, kind: input, shape index: {}]   ;;  %s427_s5 = inlined_call_operand.hbm [shape: f32[128,128], index: 5, kind: input, shape index: {}]   ;;  %s428_s6 = inlined_call_operand.vmem [shape: f32[1,128], index: 6, kind: input, shape index: {}]   ;;  %s429_s7 = inlined_call_operand.vmem [shape: f32[1,128], index: 7, kind: input, shape index: {}]   ;;  %s430_s8 = inlined_call_operand.<no memory space> [shape: f32[1,1], index: 8, kind: input, shape index: {}]   ;;  %s431_s9 = inlined_call_operand.vmem [shape: f32[8,1], index: 9, kind: output, shape index: {}]  }
   0x1   :  { %v14_v0 = vstv %s430_s8 }
   0x2   :  { %15 = vst [vmem:[#allocation2] sm:$0x1] %v14_v0 }
   0x3   :  { %16 = vsyncpa [#allocation4], 0  ;;  %s322_s11 = smov [#allocation3]   ;;  %s298_s15 = scalar_lea.hbm %s427_s5, 2048 }
   0x4   :  { %s32_s12 = sshll.u32 %s322_s11, 4  ;;  %p299_p0 = scmp.ne.s32.totalorder %s427_s5, %s298_s15  ;;  %s33_s12 = int_to_ptr.vmem [resolvable:$true] %s32_s12 }
   0x5   :  { %p302_p1 = scmp.lt.u32.totalorder %s298_s15, %s427_s5 }
   0x7   :  { %p304_p2 = pnand %p302_p1, %p299_p0 }
   0x9   :  { %307 = shalt.err (!%p304_p2)
}
   0xa   :  { %s308_s8 = scalar_lea.vmem %s33_s12, 2048  ;;  %p313_p4 = scmp.lt.s32.totalorder %s33_s12, %s33_s12 }
   0xb   :  { %p309_p3 = scmp.ne.s32.totalorder %s33_s12, %s308_s8  ;;  %p314_p5 = scmp.lt.s32.totalorder %s308_s8, %s308_s8 }
   0xd   :  { %p315_p6 = por %p314_p5, %p313_p4 }
   0xf   :  { %p316_p7 = pnand %p315_p6, %p309_p3 }
  0x11   :  { %319 = shalt.err (!%p316_p7)
}
  0x12   :  { %s323_s20 = smov 128   ;;  %s324_s21 = smov 8  }
  0x13   :  { %38 = dma.hbm_to_vmem [thread:$0]  %s427_s5, 2048, %s33_s12, [#allocation4], %s323_s20, %s323_s20, %s324_s21  }
  0x14   :  { %320 = dma.done.wait [#allocation4], 2048  }
  0x15   :  { %321 = vsyncadd [#allocation4], 4294965248  ;;  %v325_v1 = vmov 2   ;;  %v326_v2 = vmov 0   ;;  %v327_v3 = vmov 0.0   ;;  %v49_v4 = vld [vmem:[%s422_s0] sm:$0xff]  ;;  %v65_v34 = vlaneseq }
  0x16   :  { %291 = vset.pattern.permute.xlu1 %v325_v1  ;;  %289 = vset.pattern.permute.xlu0 %v326_v2  ;;  %v146_v5 = vld [vmem:[#allocation3] sm:$0xff]  ;;  %v147_v6 = vld [vmem:[#allocation3 + $0x8] sm:$0xff]  ;;  %v148_v8 = vld [vmem:[#allocation3 + $0x10] sm:$0xff]  ;;  %v328_v11 = vmov 3   ;;  %v329_v12 = vmov 1   ;;  %v330_v18 = vmov 4  }
  0x17   :  { %258 = vmatprep.subr.bf16.mxu0 %v327_v3  ;;  %82 = vperm.xlu1 %291, %v49_v4   ;;  %v162_v7 = vpack.c.bf16 %v147_v6, %v146_v5  ;;  %v149_v9 = vld [vmem:[#allocation3 + $0x18] sm:$0xff]  ;;  %v150_v13 = vld [vmem:[#allocation3 + $0x20] sm:$0xff]  ;;  %v151_v14 = vld [vmem:[#allocation3 + $0x28] sm:$0xff]  ;;  %v331_v19 = vmov 5   ;;  %vm332_vm0 = vmmov 0   ;;  %v66_v35 = vshrl.u32 %v65_v34, 7 }
  0x18   :  { %62 = vperm.xlu0 %289, %v49_v4   ;;  %v163_v10 = vpack.c.bf16 %v149_v9, %v148_v8  ;;  %v164_v15 = vpack.c.bf16 %v151_v14, %v150_v13  ;;  %v152_v16 = vld [vmem:[#allocation3 + $0x30] sm:$0xff]  ;;  %v153_v17 = vld [vmem:[#allocation3 + $0x38] sm:$0xff]  ;;  %v154_v22 = vld [vmem:[#allocation3 + $0x40] sm:$0xff]  ;;  %274 = vmatprep.mubr.msk.bf16.mxu0 %vm332_vm0, %v327_v3  ;;  %vm238_vm3 = vcmask 7168  }
  0x19   :  { %259 = vmatpush3.bf16.msra.mxu0 %v162_v7  ;;  %v165_v20 = vpack.c.bf16 %v153_v17, %v152_v16  ;;  %v50_v21 = vld [vmem:[%s423_s1] sm:$0xff]  ;;  %v155_v23 = vld [vmem:[#allocation3 + $0x48] sm:$0xff]  ;;  %v156_v25 = vld [vmem:[#allocation3 + $0x50] sm:$0xff]  ;;  %v67_v36 = vsub.s32 0, %v66_v35  ;;  %v77_v39 = vsub.s32 1, %v66_v35  ;;  %v87_v40 = vsub.s32 2, %v66_v35 }
  0x1a   :  { %260 = vmatprep.subr.bf16.mxu0 %v327_v3  ;;  %v166_v24 = vpack.c.bf16 %v155_v23, %v154_v22  ;;  %v157_v26 = vld [vmem:[#allocation3 + $0x58] sm:$0xff]  ;;  %v158_v28 = vld [vmem:[#allocation3 + $0x60] sm:$0xff]  ;;  %v159_v29 = vld [vmem:[#allocation3 + $0x68] sm:$0xff]  ;;  %v97_v45 = vsub.s32 3, %v66_v35  ;;  %v107_v47 = vsub.s32 4, %v66_v35  ;;  %v117_v52 = vsub.s32 5, %v66_v35 }
  0x1b   :  { %292 = vset.pattern.permute.xlu1 %v328_v11  ;;  %v167_v27 = vpack.c.bf16 %v157_v26, %v156_v25  ;;  %v168_v30 = vpack.c.bf16 %v159_v29, %v158_v28  ;;  %v160_v31 = vld [vmem:[#allocation3 + $0x70] sm:$0xff]  ;;  %v161_v32 = vld [vmem:[#allocation3 + $0x78] sm:$0xff] }
  0x1c   :  { %290 = vset.pattern.permute.xlu0 %v329_v12  ;;  %92 = vperm.xlu1 %292, %v49_v4   ;;  %v169_v33 = vpack.c.bf16 %v161_v32, %v160_v31  ;;  %v51_v37 = vld [vmem:[%s424_s2] sm:$0x3f] }
  0x1d   :  { %72 = vperm.xlu0 %290, %v49_v4   ;;  %261 = vmatpush3.bf16.msra.mxu0 %v163_v10  ;;  %v68_v38 = vrot.slane %v51_v37, %v67_v36  ;;  %v245_v43 = vld [vmem:[%s426_s4] ss:$0 sm:$0xff]  ;;  %v78_v46 = vrot.slane %v51_v37, %v77_v39  ;;  %v88_v48 = vrot.slane %v51_v37, %v87_v40 }
  0x1e   :  { %262 = vmatprep.subr.bf16.mxu0 %v327_v3  ;;  %v98_v53 = vrot.slane %v51_v37, %v97_v45  ;;  %v108_v55 = vrot.slane %v51_v37, %v107_v47  ;;  %v118_v58 = vrot.slane %v51_v37, %v117_v52  ;;  %v52_v63 = vld [vmem:[%s425_s3] sm:$0x3] }
  0x1f   :  { %v139_v8 = vrot.slane %v52_v63, %v77_v39  ;;  %v246_v16 = vld [vmem:[%s428_s6] ss:$0 sm:$0xff] }
  0x20   :  { %293 = vset.pattern.permute.xlu1 %v330_v18  ;;  %v247_v23 = vld [vmem:[%s429_s7] ss:$0 sm:$0xff] }
  0x21   :  { %294 = vset.pattern.permute.xlu0 %v331_v19  ;;  %102 = vperm.xlu1 %293, %v49_v4   ;;  %v248_v26 = vld [vmem:[#allocation2] ss:$0 sm:$0xff] }
  0x22   :  { %112 = vperm.xlu0 %294, %v49_v4   ;;  %263 = vmatpush3.bf16.msra.mxu0 %v164_v15 }
  0x23   :  { %264 = vmatprep.subr.bf16.mxu0 %v327_v3 }
  0x25   :  { %295 = vset.pattern.permute.xlu1 %v326_v2 }
  0x26   :  { %297 = vset.pattern.permute.xlu0 %v329_v12  ;;  %123 = vperm.xlu1 %295, %v50_v21  }
  0x27   :  { %265 = vmatpush3.bf16.msra.mxu0 %v165_v20 }
  0x28   :  { %266 = vmatprep.subr.bf16.mxu0 %v327_v3 }
  0x2a   :  { %296 = vset.pattern.permute.xlu1 %v329_v12 }
  0x2b   :  { %267 = vmatpush3.bf16.msra.mxu0 %v166_v24  ;;  %133 = vperm.xlu1 %296, %v50_v21  }
  0x2c   :  { %268 = vmatprep.subr.bf16.mxu0 %v327_v3 }
  0x2f   :  { %269 = vmatpush3.bf16.msra.mxu0 %v167_v27 }
  0x30   :  { %270 = vmatprep.subr.bf16.mxu0 %v327_v3 }
  0x33   :  { %271 = vmatpush3.bf16.msra.mxu0 %v168_v30 }
  0x34   :  { %272 = vmatprep.subr.bf16.mxu0 %v327_v3  ;;  %v129_v3 = vrot.slane %v52_v63, %v67_v36 }
  0x37   :  { %273 = vmatpush3.bf16.msra.mxu0 %v169_v33 }
  0x96   :  { %v83_v41 = vpop.permute.xlu1 %82 }
  0x97   :  { %v63_v42 = vpop.permute.xlu0 %62  ;;  %v89_v56 = vmul.f32 %v88_v48, %v83_v41 }
  0x98   :  { %v69_v44 = vmul.f32 %v68_v38, %v63_v42 }
  0x9a   :  { %v70_v49 = vadd.f32 %v245_v43, %v69_v44 }
  0x9b   :  { %v93_v50 = vpop.permute.xlu1 %92 }
  0x9c   :  { %v73_v51 = vpop.permute.xlu0 %72  ;;  %v99_v59 = vmul.f32 %v98_v53, %v93_v50 }
  0x9d   :  { %v79_v54 = vmul.f32 %v78_v46, %v73_v51 }
  0x9f   :  { %v80_v57 = vadd.f32 %v79_v54, %v70_v49 }
  0xa0   :  { %v103_v61 = vpop.permute.xlu1 %102 }
  0xa1   :  { %v90_v60 = vadd.f32 %v89_v56, %v80_v57  ;;  %v113_v62 = vpop.permute.xlu0 %112  ;;  %v109_v0 = vmul.f32 %v108_v55, %v103_v61 }
  0xa2   :  { %v119_v2 = vmul.f32 %v118_v58, %v113_v62 }
  0xa3   :  { %v100_v1 = vadd.f32 %v99_v59, %v90_v60 }
  0xa5   :  { %v110_v4 = vadd.f32 %v109_v0, %v100_v1  ;;  %v124_v5 = vpop.permute.xlu1 %123 }
  0xa6   :  { %v130_v7 = vmul.f32 %v129_v3, %v124_v5 }
  0xa7   :  { %v120_v6 = vadd.f32 %v119_v2, %v110_v4 }
  0xa9   :  { %v131_v10 = vadd.f32 %v130_v7, %v120_v6 }
  0xaa   :  { %v134_v9 = vpop.permute.xlu1 %133 }
  0xab   :  { %v140_v11 = vmul.f32 %v139_v8, %v134_v9 }
  0xad   :  { %v141_v12 = vadd.f32 %v140_v11, %v131_v10 }
  0xaf   :  { %v143_v13 = vmul.f32 0.01, %v141_v12  ;;  %vm142_vm1 = vcmp.gt.f32.partialorder %v141_v12, 0.0 }
  0xb1   :  { %v144_v14 = vsel %vm142_vm1, %v141_v12, %v143_v13 }
  0xb2   :  { %v145_v15 = vpack.c.bf16 %v144_v14, %v144_v14 }
  0xb4   :  { %275 = vmatmul.mubr.bf16.vlgmr.msra.gmra.mrb[0].mxu0 %v145_v15 }
 0x187   :  { %v211_v17 = vpop.f32.mrb[0].mxu0 }
 0x188   :  { %v212_v18 = vadd.f32 %v246_v16, %v211_v17  ;;  %v276_v19 = vpop.f32.mrb[1].mxu0 }
 0x189   :  { %v214_v20 = vpop.f32.mrb[2].mxu0 }
 0x18a   :  { %v218_v21 = vmul.f32 0.01, %v212_v18  ;;  %v277_v22 = vpop.f32.mrb[3].mxu0  ;;  %vm217_vm2 = vcmp.gt.f32.partialorder %v212_v18, 0.0 }
 0x18c   :  { %v219_v24 = vsel %vm217_vm2, %v212_v18, %v218_v21 }
 0x18d   :  { %v227_v25 = vmul.f32 %v247_v23, %v219_v24 }
 0x18f   :  { %228 = vadd.xlane.f32.xlu0 %v227_v25 }
 0x21c   :  { %v229_v27 = vpop.xlane.xlu0 %228 }
 0x21d   :  { %v237_v28 = vadd.f32 %v248_v26, %v229_v27 }
 0x21f   :  { %239 = vst.msk [vmem:[%s431_s9] sm:$0xff] %vm238_vm3, %v237_v28 }
 0x220   :  { %244 = vsyncpa [#allocation4], 1 }

</bundles_post_ra>
